<compile_context>
chip_gen: v7x
topology: tpu7x:2x2x1
jax: 0.10.0
libtpu: 0.0.40
codegen_flags: <defaults>
</compile_context>

<pallas_src>
import jax
import jax.numpy as jnp
from jax.experimental import pallas as pl
from jax.experimental.pallas import tpu as pltpu


_DIN = 1 + 1 + 88  # KeyEventEncoder input feature dim


def _round_up(n: int, m: int) -> int:
    return ((n + m - 1) // m) * m


def _make_mlp_kernel(n_linear: int, compute_dtype):
    """Fused-MLP kernel for a fixed number of Linear layers.

    refs layout: (x_ref, w0, b0, w1, b1, ..., w_{L-1}, b_{L-1}, o_ref)
    x keeps its HBM dtype and is cast to compute_dtype on-chip; weights are in
    compute_dtype; biases are f32; accumulation is f32 on the MXU.
    """

    def kernel(*refs):
        x_ref = refs[0]
        o_ref = refs[-1]
        wb_refs = refs[1:-1]

        # On-chip cast (free under the DMA); avoids a wrapper-side HBM round trip.
        h = x_ref[...].astype(compute_dtype)          # (tile_rows, 90)
        for li in range(n_linear):
            w = wb_refs[2 * li][...]                  # (din, dout) compute_dtype
            b = wb_refs[2 * li + 1][...]              # (1, dout)   float32
            acc = jnp.dot(h, w, preferred_element_type=jnp.float32) + b
            if li < n_linear - 1:
                # ReLU in f32 on the VPU; only the next matmul operand narrows.
                h = jnp.maximum(acc, 0.0).astype(compute_dtype)
            else:
                h = acc
        o_ref[...] = h.astype(o_ref.dtype)

    return kernel


def init_key_event_encoder_params(key, d_model: int, d_hidden: int, n_layers: int):
    """Mimics torch.nn.Linear default init (uniform +- 1/sqrt(fan_in)).

    Returns a flat list [w0, b0, w1, b1, ...] with w stored as (in_dim, out_dim)
    (transposed relative to PyTorch's (out, in) layout) and b as (1, out_dim).
    """
    dims = []
    current = _DIN
    for _ in range(n_layers - 1):
        dims.append((current, d_hidden))
        current = d_hidden
    dims.append((current, d_model))

    params = []
    for (din, dout) in dims:
        key, kw, kb = jax.random.split(key, 3)
        bound = 1.0 / jnp.sqrt(jnp.float32(din))
        w = jax.random.uniform(kw, (din, dout), jnp.float32, -bound, bound)
        b = jax.random.uniform(kb, (1, dout), jnp.float32, -bound, bound)
        params += [w, b]
    return params


def key_event_encoder_ref(x, params, compute_dtype=jnp.float32):
    """Pure-JAX reference of the PyTorch forward pass (optionally with the same
    low-precision matmul operands as the kernel)."""
    n_linear = len(params) // 2
    h = x.astype(compute_dtype)
    for li in range(n_linear):
        w = params[2 * li].astype(compute_dtype)
        b = params[2 * li + 1].astype(jnp.float32)
        h = jnp.dot(h, w, preferred_element_type=jnp.float32) + b
        if li < n_linear - 1:
            h = jnp.maximum(h, 0.0).astype(compute_dtype)
    return h.astype(jnp.float32)


def key_event_encoder(x, params, *, tile_rows: int = 4096,
                      compute_dtype=jnp.float32,
                      out_dtype=jnp.float32,
                      min_pallas_rows: int = 1024):
    """x: (batch, seq, 90) -> (batch, seq, d_model) in out_dtype.

    tile_rows:      rows of key events per grid step (rounded to a multiple of
                    16; clamped so the grid has >= 2 steps when possible, which
                    lets v7x's two TensorCores both participate).
    compute_dtype:  dtype of the matmul operands.  Cast happens inside the
                    kernel, so this does NOT change HBM traffic for f32 callers;
                    pass bf16 x + compute_dtype=bf16 to halve the input read.
    out_dtype:      output dtype (bf16 halves the write traffic if tolerated).
    min_pallas_rows: below this many rows, dispatch to the fused pure-JAX path
                    (launch/pad overhead dominates for tiny workloads).
    """
    batch, seq, din = x.shape
    assert din == _DIN, "KeyEventEncoder input feature dim must be 1+1+88 = 90"
    n_linear = len(params) // 2
    d_model = params[-2].shape[1]
    n_rows = batch * seq

    # Tiny-input fast path: XLA fuses this MLP fine at that scale.
    if n_rows < min_pallas_rows:
        return key_event_encoder_ref(x, params, compute_dtype).astype(out_dtype)

    # --- tile selection -----------------------------------------------------
    # Multiple of 16 (bf16 sublane packing unit; harmless for f32).
    tile_rows = max(16, _round_up(int(tile_rows), 16))
    # Keep >= 2 grid steps when the input allows it (v7x megacore sharding).
    half_rows = _round_up(max(1, -(-n_rows // 2)), 16)
    tile_rows = min(tile_rows, half_rows)
    # Never exceed the (16-rounded) row count.
    tile_rows = min(tile_rows, _round_up(n_rows, 16))

    n_rows_padded = _round_up(n_rows, tile_rows)
    grid = (n_rows_padded // tile_rows,)

    # x stays in its own dtype (no wrapper-side cast => no extra HBM pass).
    x_rows = x.reshape(n_rows, din)
    if n_rows_padded != n_rows:
        # Only materialized when the clamped tile does not divide batch*seq.
        x_rows = jnp.pad(x_rows, ((0, n_rows_padded - n_rows), (0, 0)))

    # Weights in compute_dtype (MXU operands); biases stay f32 (added post-MXU).
    ops = []
    for li in range(n_linear):
        ops.append(params[2 * li].astype(compute_dtype))
        ops.append(params[2 * li + 1].astype(jnp.float32))

    kernel = _make_mlp_kernel(n_linear, compute_dtype)

    # x tiled over rows; each weight/bias is one full-array block whose block
    # index never changes -> Pallas keeps it VMEM-resident (no per-step re-DMA).
    in_specs = [pl.BlockSpec((tile_rows, din), lambda i: (i, 0))]
    for p in ops:
        in_specs.append(pl.BlockSpec(p.shape, lambda i: (0, 0)))
    out_spec = pl.BlockSpec((tile_rows, d_model), lambda i: (i, 0))

    # Advisory cost hint so XLA can schedule neighbouring ops around the call.
    layer_dims = [(params[2 * li].shape[0], params[2 * li].shape[1])
                  for li in range(n_linear)]
    flops = 2 * n_rows_padded * sum(di * do for di, do in layer_dims)
    bytes_accessed = (
        n_rows_padded * din * jnp.dtype(x.dtype).itemsize
        + n_rows_padded * d_model * jnp.dtype(out_dtype).itemsize
        + sum(int(p.size) * p.dtype.itemsize for p in ops))
    cost = pl.CostEstimate(flops=int(flops), transcendentals=0,
                           bytes_accessed=int(bytes_accessed))

    out_rows = pl.pallas_call(
        kernel,
        out_shape=jax.ShapeDtypeStruct((n_rows_padded, d_model), out_dtype),
        grid_spec=pltpu.PrefetchScalarGridSpec(
            num_scalar_prefetch=0,
            grid=grid,
            in_specs=in_specs,
            out_specs=out_spec,
        ),
        compiler_params=pltpu.CompilerParams(
            dimension_semantics=("parallel",)),
        cost_estimate=cost,
    )(x_rows, *ops)

    if n_rows_padded != n_rows:
        out_rows = out_rows[:n_rows]
    return out_rows.reshape(batch, seq, d_model)


if __name__ == "__main__":
    d_model, d_hidden, n_layers = 32, 32, 3

    key = jax.random.PRNGKey(0)
    params = init_key_event_encoder_params(key, d_model, d_hidden, n_layers)

    # --- Case 1: small demo shape, single-step grid, exact f32 path ---------
    batch, seq = 2, 8  # 16 key-event rows; tile clamps to 16
    key, kx = jax.random.split(key)
    x = jax.random.normal(kx, (batch, seq, _DIN), jnp.float32)

    ref_f32 = key_event_encoder_ref(x, params)
    out_f32 = key_event_encoder(x, params, min_pallas_rows=0)  # force kernel path
    out_f32 = jax.block_until_ready(out_f32)
    assert out_f32.shape == (batch, seq, d_model)
    assert jnp.allclose(out_f32, ref_f32, atol=1e-4, rtol=1e-4), "f32 mismatch (small)"

    # --- Case 2: multi-step grid (exercises row tiling + 'parallel' axis) ---
    batch2, seq2 = 4, 96  # 384 rows; tile_rows=128 -> grid=(3,)
    key, kx2 = jax.random.split(key)
    x2 = jax.random.normal(kx2, (batch2, seq2, _DIN), jnp.float32)

    ref2 = key_event_encoder_ref(x2, params)
    out2 = key_event_encoder(x2, params, tile_rows=128, min_pallas_rows=0)
    out2 = jax.block_until_ready(out2)
    assert out2.shape == (batch2, seq2, d_model)
    assert jnp.allclose(out2, ref2, atol=1e-4, rtol=1e-4), "f32 mismatch (tiled)"

    # --- Case 3: low-traffic path — caller-provided bf16 x, bf16 operands ---
    x_bf16 = x2.astype(jnp.bfloat16)
    out_bf16 = key_event_encoder(x_bf16, params, tile_rows=128,
                                 compute_dtype=jnp.bfloat16, min_pallas_rows=0)
    out_bf16 = jax.block_until_ready(out_bf16)
    ref_bf16 = key_event_encoder_ref(x2, params, compute_dtype=jnp.bfloat16)
    assert out_bf16.shape == (batch2, seq2, d_model)
    assert jnp.allclose(out_bf16, ref_bf16, atol=2e-3, rtol=2e-3), "bf16 mismatch"
    assert jnp.allclose(out_bf16, ref2, atol=5e-2, rtol=5e-2), "bf16 drift too large"

    print("KERNEL_OK")
</pallas_src>

<mosaic_0001>
module attributes {stable_mosaic.version = 11 : i64} {
  func.func @kernel(%arg0: i32, %arg1: memref<16x90xf32, #tpu.memory_space<vmem>>, %arg2: memref<90x32xf32, #tpu.memory_space<vmem>>, %arg3: memref<1x32xf32, #tpu.memory_space<vmem>>, %arg4: memref<32x32xf32, #tpu.memory_space<vmem>>, %arg5: memref<1x32xf32, #tpu.memory_space<vmem>>, %arg6: memref<32x32xf32, #tpu.memory_space<vmem>>, %arg7: memref<1x32xf32, #tpu.memory_space<vmem>>, %arg8: memref<16x32xf32, #tpu.memory_space<vmem>>) attributes {dimension_semantics = [#tpu.dimension_semantics<parallel>], iteration_bounds = array<i64: 1>, scalar_prefetch = 0 : i64, scratch_operands = 0 : i64, tpu.core_type = #tpu.core_type<tc>, window_params = [{transform_indices = @transform_0, window_bounds = array<i64: 16, 90>}, {pipeline_mode = #tpu.pipeline_mode<synchronous>, transform_indices = @transform_1, window_bounds = array<i64: 90, 32>}, {pipeline_mode = #tpu.pipeline_mode<synchronous>, transform_indices = @transform_2, window_bounds = array<i64: 1, 32>}, {pipeline_mode = #tpu.pipeline_mode<synchronous>, transform_indices = @transform_3, window_bounds = array<i64: 32, 32>}, {pipeline_mode = #tpu.pipeline_mode<synchronous>, transform_indices = @transform_4, window_bounds = array<i64: 1, 32>}, {pipeline_mode = #tpu.pipeline_mode<synchronous>, transform_indices = @transform_5, window_bounds = array<i64: 32, 32>}, {pipeline_mode = #tpu.pipeline_mode<synchronous>, transform_indices = @transform_6, window_bounds = array<i64: 1, 32>}, {transform_indices = @transform_7, window_bounds = array<i64: 16, 32>}]} {
    %c0 = arith.constant 0 : index
    %c0_0 = arith.constant 0 : index
    %0 = vector.load %arg1[%c0, %c0_0] : memref<16x90xf32, #tpu.memory_space<vmem>>, vector<16x90xf32>
    %c0_1 = arith.constant 0 : index
    %c0_2 = arith.constant 0 : index
    %1 = vector.load %arg2[%c0_1, %c0_2] : memref<90x32xf32, #tpu.memory_space<vmem>>, vector<90x32xf32>
    %c0_3 = arith.constant 0 : index
    %c0_4 = arith.constant 0 : index
    %2 = vector.load %arg3[%c0_3, %c0_4] : memref<1x32xf32, #tpu.memory_space<vmem>>, vector<1x32xf32>
    %cst = arith.constant dense<0.000000e+00> : vector<16x32xf32>
    %3 = tpu.matmul %0, %1, %cst {dimension_numbers = #tpu.dot_dimension_numbers<[1], [0], [0], [1], [0, 0, 1, 1], [], []>} : vector<16x90xf32>, vector<90x32xf32>, vector<16x32xf32> -> vector<16x32xf32>
    %4 = vector.broadcast %2 : vector<1x32xf32> to vector<16x32xf32>
    %5 = arith.addf %3, %4 : vector<16x32xf32>
    %cst_5 = arith.constant 0.000000e+00 : f32
    %6 = vector.broadcast %cst_5 : f32 to vector<16x32xf32>
    %7 = arith.maximumf %5, %6 : vector<16x32xf32>
    %c0_6 = arith.constant 0 : index
    %c0_7 = arith.constant 0 : index
    %8 = vector.load %arg4[%c0_6, %c0_7] : memref<32x32xf32, #tpu.memory_space<vmem>>, vector<32x32xf32>
    %c0_8 = arith.constant 0 : index
    %c0_9 = arith.constant 0 : index
    %9 = vector.load %arg5[%c0_8, %c0_9] : memref<1x32xf32, #tpu.memory_space<vmem>>, vector<1x32xf32>
    %cst_10 = arith.constant dense<0.000000e+00> : vector<16x32xf32>
    %10 = tpu.matmul %7, %8, %cst_10 {dimension_numbers = #tpu.dot_dimension_numbers<[1], [0], [0], [1], [0, 0, 1, 1], [], []>} : vector<16x32xf32>, vector<32x32xf32>, vector<16x32xf32> -> vector<16x32xf32>
    %11 = vector.broadcast %9 : vector<1x32xf32> to vector<16x32xf32>
    %12 = arith.addf %10, %11 : vector<16x32xf32>
    %cst_11 = arith.constant 0.000000e+00 : f32
    %13 = vector.broadcast %cst_11 : f32 to vector<16x32xf32>
    %14 = arith.maximumf %12, %13 : vector<16x32xf32>
    %c0_12 = arith.constant 0 : index
    %c0_13 = arith.constant 0 : index
    %15 = vector.load %arg6[%c0_12, %c0_13] : memref<32x32xf32, #tpu.memory_space<vmem>>, vector<32x32xf32>
    %c0_14 = arith.constant 0 : index
    %c0_15 = arith.constant 0 : index
    %16 = vector.load %arg7[%c0_14, %c0_15] : memref<1x32xf32, #tpu.memory_space<vmem>>, vector<1x32xf32>
    %cst_16 = arith.constant dense<0.000000e+00> : vector<16x32xf32>
    %17 = tpu.matmul %14, %15, %cst_16 {dimension_numbers = #tpu.dot_dimension_numbers<[1], [0], [0], [1], [0, 0, 1, 1], [], []>} : vector<16x32xf32>, vector<32x32xf32>, vector<16x32xf32> -> vector<16x32xf32>
    %18 = vector.broadcast %16 : vector<1x32xf32> to vector<16x32xf32>
    %19 = arith.addf %17, %18 : vector<16x32xf32>
    %c0_17 = arith.constant 0 : index
    %c0_18 = arith.constant 0 : index
    %20 = vector.load %arg8[%c0_17, %c0_18] : memref<16x32xf32, #tpu.memory_space<vmem>>, vector<16x32xf32>
    tpu.vector_store %arg8[%c0_17, %c0_18], %19 {strides = array<i32>} : memref<16x32xf32, #tpu.memory_space<vmem>>, vector<16x32xf32>,
    return
  }
  func.func @transform_0(%arg0: i32) -> (i32, i32) {
    %c0_i32 = arith.constant 0 : i32
    %c0_i32_0 = arith.constant 0 : i32
    return %arg0, %c0_i32 : i32, i32
  }
  func.func @transform_1(%arg0: i32) -> (i32, i32) {
    %c0_i32 = arith.constant 0 : i32
    %c0_i32_0 = arith.constant 0 : i32
    %c0_i32_1 = arith.constant 0 : i32
    return %c0_i32, %c0_i32_0 : i32, i32
  }
  func.func @transform_2(%arg0: i32) -> (i32, i32) {
    %c0_i32 = arith.constant 0 : i32
    %c0_i32_0 = arith.constant 0 : i32
    %c0_i32_1 = arith.constant 0 : i32
    return %c0_i32, %c0_i32_0 : i32, i32
  }
  func.func @transform_3(%arg0: i32) -> (i32, i32) {
    %c0_i32 = arith.constant 0 : i32
    %c0_i32_0 = arith.constant 0 : i32
    %c0_i32_1 = arith.constant 0 : i32
    return %c0_i32, %c0_i32_0 : i32, i32
  }
  func.func @transform_4(%arg0: i32) -> (i32, i32) {
    %c0_i32 = arith.constant 0 : i32
    %c0_i32_0 = arith.constant 0 : i32
    %c0_i32_1 = arith.constant 0 : i32
    return %c0_i32, %c0_i32_0 : i32, i32
  }
  func.func @transform_5(%arg0: i32) -> (i32, i32) {
    %c0_i32 = arith.constant 0 : i32
    %c0_i32_0 = arith.constant 0 : i32
    %c0_i32_1 = arith.constant 0 : i32
    return %c0_i32, %c0_i32_0 : i32, i32
  }
  func.func @transform_6(%arg0: i32) -> (i32, i32) {
    %c0_i32 = arith.constant 0 : i32
    %c0_i32_0 = arith.constant 0 : i32
    %c0_i32_1 = arith.constant 0 : i32
    return %c0_i32, %c0_i32_0 : i32, i32
  }
  func.func @transform_7(%arg0: i32) -> (i32, i32) {
    %c0_i32 = arith.constant 0 : i32
    %c0_i32_0 = arith.constant 0 : i32
    return %arg0, %c0_i32 : i32, i32
  }
}

</mosaic_0001>

<bundles_post_ra>
// kernel: tpu_custom_call.1
= control target key start
LH: loop header
LB: loop body
LE: loop exit
PB: predicated region body
PF: predicated region fallthrough
CT: control target
= control target key end

     0   :  { %vm48_vm0 = vcmask 736256   ;;  %s635_s0 = inlined_call_operand.vmem [shape: f32[16,90], index: 0, kind: input, shape index: {}]   ;;  %s636_s1 = inlined_call_operand.vmem [shape: f32[90,32], index: 1, kind: input, shape index: {}]   ;;  %s637_s2 = inlined_call_operand.vmem [shape: f32[1,32], index: 2, kind: input, shape index: {}]   ;;  %s638_s3 = inlined_call_operand.vmem [shape: f32[32,32], index: 3, kind: input, shape index: {}]   ;;  %s639_s4 = inlined_call_operand.vmem [shape: f32[1,32], index: 4, kind: input, shape index: {}]   ;;  %s640_s5 = inlined_call_operand.vmem [shape: f32[32,32], index: 5, kind: input, shape index: {}]   ;;  %s641_s6 = inlined_call_operand.vmem [shape: f32[1,32], index: 6, kind: input, shape index: {}]   ;;  %s642_s7 = inlined_call_operand.hbm [shape: f32[16,32], index: 7, kind: output, shape index: {}]  }
   0x1   :  { %v29_v0 = vld [vmem:[%s636_s1] sm:$0xff]  ;;  %v30_v1 = vld [vmem:[%s636_s1 + $0x8] sm:$0xff]  ;;  %v31_v2 = vld [vmem:[%s636_s1 + $0x10] sm:$0xff] }
   0x2   :  { %v426_v3 = vpack.c.bf16 %v30_v1, %v29_v0  ;;  %v32_v4 = vld [vmem:[%s636_s1 + $0x18] sm:$0xff]  ;;  %v33_v6 = vld [vmem:[%s636_s1 + $0x20] sm:$0xff]  ;;  %v34_v7 = vld [vmem:[%s636_s1 + $0x28] sm:$0xff] }
   0x3   :  { %v430_v5 = vpack.c.bf16 %v32_v4, %v31_v2  ;;  %v27_v8 = vld [vmem:[%s635_s0] sm:$0xff]  ;;  %v434_v9 = vpack.c.bf16 %v34_v7, %v33_v6  ;;  %v137_v11 = vld [vmem:[%s638_s3 + $0x8] sm:$0xff] }
   0x4   :  { %427 = vmatprep.subr.bf16.mxu0 %v426_v3  ;;  %401 = vmatprep.mubr.msk.f32.mxu0 %vm48_vm0, %v27_v8  ;;  %v136_v10 = vld [vmem:[%s638_s3] sm:$0xff] }
   0x5   :  { %429 = vmatpush3.bf16.msra.mxu0 %v426_v3 }
   0x6   :  { %431 = vmatprep.subr.bf16.mxu0 %v430_v5 }
   0x7   :  { %12 = vsyncpa [#allocation3], 0  ;;  %v35_v12 = vld [vmem:[%s636_s1 + $0x30] sm:$0xff]  ;;  %v36_v13 = vld [vmem:[%s636_s1 + $0x38] sm:$0xff]  ;;  %v452_v14 = vpack.c.bf16 %v137_v11, %v136_v10  ;;  %vm55_vm1 = vcmask 1041408   ;;  %vm496_vm2 = vmmov 1  }
   0x8   :  { %v438_v15 = vpack.c.bf16 %v36_v13, %v35_v12  ;;  %v37_v16 = vld [vmem:[%s636_s1 + $0x40] sm:$0xff]  ;;  %v38_v17 = vld [vmem:[%s636_s1 + $0x48] sm:$0xff]  ;;  %v39_v19 = vld [vmem:[%s636_s1 + $0x50] sm:$0xff]  ;;  %vm147_vm4 = vcmask 261120  }
   0x9   :  { %433 = vmatpush3.bf16.msra.mxu0 %v430_v5  ;;  %453 = vmatprep.subr.bf16.mxu1 %v452_v14  ;;  %v442_v18 = vpack.c.bf16 %v38_v17, %v37_v16  ;;  %v40_v20 = vld [vmem:[%s636_s1 + $0x58] sm:$0x3]  ;;  %vm447_vm3 = vmpackc.low %vm55_vm1, %vm496_vm2  ;;  %v28_v22 = vld [vmem:[%s635_s0 + $0x8] sm:$0xff] }
   0xa   :  { %435 = vmatprep.subr.bf16.mxu0 %v434_v9  ;;  %455 = vmatpush3.bf16.msra.mxu1 %v452_v14  ;;  %v446_v21 = vpack.c.bf16 %v40_v20, %v39_v19  ;;  %v138_v23 = vld [vmem:[%s638_s3 + $0x10] sm:$0xff]  ;;  %v139_v24 = vld [vmem:[%s638_s3 + $0x18] sm:$0xff]  ;;  %v231_v26 = vld [vmem:[%s640_s5] sm:$0xff] }
   0xb   :  { %v456_v25 = vpack.c.bf16 %v139_v24, %v138_v23  ;;  %v232_v27 = vld [vmem:[%s640_s5 + $0x8] sm:$0xff]  ;;  %v341_v29 = vld [vmem:[%s637_s2] ss:$0 sm:$0xff]  ;;  %v233_v36 = vld [vmem:[%s640_s5 + $0x10] sm:$0xff] }
   0xc   :  { %v460_v28 = vpack.c.bf16 %v232_v27, %v231_v26  ;;  %v234_v37 = vld [vmem:[%s640_s5 + $0x18] sm:$0xff]  ;;  %v345_v39 = vld [vmem:[%s639_s4] ss:$0 sm:$0xff]  ;;  %s497_s5 = smov [#allocation2]  }
   0xd   :  { %437 = vmatpush3.bf16.msra.mxu0 %v434_v9  ;;  %457 = vmatprep.subr.bf16.mxu1 %v456_v25  ;;  %v464_v38 = vpack.c.bf16 %v234_v37, %v233_v36  ;;  %v348_v46 = vld [vmem:[%s641_s6] ss:$0 sm:$0xff]  ;;  %s330_s24 = sshll.u32 %s497_s5, 4  ;;  %s331_s24 = int_to_ptr.vmem [resolvable:$true] %s330_s24 }
   0xe   :  { %439 = vmatprep.subr.bf16.mxu0 %v438_v15  ;;  %459 = vmatpush3.bf16.msra.mxu1 %v456_v25  ;;  %s472_s4 = scalar_lea.vmem %s331_s24, 256  ;;  %p477_p1 = scmp.lt.s32.totalorder %s331_s24, %s331_s24 }
   0xf   :  { %461 = vmatprep.subr.bf16.mxu1 %v460_v28  ;;  %p473_p0 = scmp.ne.s32.totalorder %s331_s24, %s472_s4  ;;  %p478_p2 = scmp.lt.s32.totalorder %s472_s4, %s472_s4 }
  0x11   :  { %441 = vmatpush3.bf16.msra.mxu0 %v438_v15  ;;  %p479_p3 = por %p478_p2, %p477_p1 }
  0x12   :  { %443 = vmatprep.subr.bf16.mxu0 %v442_v18 }
  0x13   :  { %p480_p4 = pnand %p479_p3, %p473_p0 }
  0x15   :  { %445 = vmatpush3.bf16.msra.mxu0 %v442_v18 }
  0x16   :  { %448 = vmatprep.subr.msk.bf16.mxu0 %vm447_vm3, %v446_v21 }
  0x19   :  { %451 = vmatpush3.bf16.msk.msra.mxu0 %vm447_vm3, %v446_v21 }
  0x1c   :  { %402 = vmatmul.mubr.msk.f32.vlgmr.msra.gmra.mrb[0].mxu0 %vm48_vm0, %v28_v22 }
  0xef   :  { %v403_v30 = vpop.f32.mrb[0].mxu0 }
  0xf0   :  { %v131_v31 = vadd.f32 %v403_v30, %v341_v29  ;;  %v125_v32 = vpop.f32.mrb[1].mxu0 }
  0xf1   :  { %v126_v33 = vadd.f32 %v341_v29, %v125_v32 }
  0xf2   :  { %v135_v35 = vmax.f32 %v131_v31, 0.0 }
  0xf3   :  { %v134_v34 = vmax.f32 %v126_v33, 0.0 }
  0xf5   :  { %412 = vmatprep.mubr.msk.f32.mxu1 %vm147_vm4, %v134_v34 }
  0xf6   :  { %413 = vmatmul.mubr.msk.f32.vlgmr.msra.gmra.mrb[0].mxu1 %vm147_vm4, %v135_v35 }
  0xf7   :  { %463 = vmatpush3.bf16.msra.mxu1 %v460_v28 }
  0xf8   :  { %465 = vmatprep.subr.bf16.mxu1 %v464_v38 }
  0xfb   :  { %467 = vmatpush3.bf16.msra.mxu1 %v464_v38 }
 0x1c9   :  { %v414_v40 = vpop.f32.mrb[0].mxu1 }
 0x1ca   :  { %v226_v41 = vadd.f32 %v414_v40, %v345_v39  ;;  %v220_v42 = vpop.f32.mrb[1].mxu1 }
 0x1cb   :  { %v221_v43 = vadd.f32 %v345_v39, %v220_v42 }
 0x1cc   :  { %v230_v45 = vmax.f32 %v226_v41, 0.0 }
 0x1cd   :  { %v229_v44 = vmax.f32 %v221_v43, 0.0 }
 0x1cf   :  { %423 = vmatprep.mubr.msk.f32.mxu1 %vm147_vm4, %v229_v44 }
 0x1d0   :  { %424 = vmatmul.mubr.msk.f32.vlgmr.msra.gmra.mrb[2].mxu1 %vm147_vm4, %v230_v45 }
 0x2a3   :  { %v425_v47 = vpop.f32.mrb[2].mxu1 }
 0x2a4   :  { %v320_v48 = vadd.f32 %v425_v47, %v348_v46  ;;  %v314_v49 = vpop.f32.mrb[3].mxu1 }
 0x2a5   :  { %v315_v50 = vadd.f32 %v348_v46, %v314_v49 }
 0x2a6   :  { %324 = vst.msk [vmem:[#allocation2 + $0x8] sm:$0xff] %vm147_vm4, %v320_v48 }
 0x2a7   :  { %323 = vst.msk [vmem:[#allocation2] sm:$0xff] %vm147_vm4, %v315_v50 }
 0x2a8   :  { %483 = shalt.err (!%p480_p4)
}
 0x2a9   :  { %s484_s26 = scalar_lea.hbm %s642_s7, 256 }
 0x2aa   :  { %p485_p5 = scmp.ne.s32.totalorder %s642_s7, %s484_s26  ;;  %p488_p6 = scmp.lt.u32.totalorder %s484_s26, %s642_s7 }
 0x2ac   :  { %p490_p7 = pnand %p488_p6, %p485_p5 }
 0x2ae   :  { %493 = shalt.err (!%p490_p7)
}
 0x2af   :  { %s498_s8 = smov 128   ;;  %s499_s9 = smov 8  }
 0x2b0   :  { %336 = dma.vmem_to_hbm [thread:$0]  %s331_s24, 256, %s642_s7, [#allocation3], %s498_s8, %s498_s8, %s499_s9  }
 0x2b1   :  { %494 = dma.done.wait [#allocation3], 256  }
 0x2b2   :  { %495 = vsyncadd [#allocation3], 4294967040 }
 0x2b3   :  { %340 = vsyncpa [#allocation3], 1 }

</bundles_post_ra>
